<compile_context>
chip_gen: v7x
topology: tpu7x:2x2x1
jax: 0.10.0
libtpu: 0.0.40
codegen_flags: <defaults>
</compile_context>

<pallas_src>
import jax
import jax.numpy as jnp
from jax import lax
from jax.experimental import pallas as pl
from jax.experimental.pallas import tpu as pltpu

LRELU_SLOPE = 0.2        # TODO(synk): slope of get_activation_layer('lrelu') assumed 0.2
IN_EPS = 1e-5
_VMEM_LIMIT = 32 * 1024 * 1024   # conservative scoped-VMEM budget; safe on v7x (64 MiB phys)

# ConvTranspose2d(k=4, s=2, p=1): output pixel (2i+ry, 2j+rx) reads padded-input rows
# {i+ry, i+ry+1} / cols {j+rx, j+rx+1}, using kernel taps ky=_KTAB[ry][dy], kx=_KTAB[rx][dx].
_KTAB = ((3, 1), (2, 0))


# ---------------- Pallas kernels ----------------

def _convT_kernel(x0_ref, x1_ref, x2_ref, w_ref, b2_ref, o_ref):
    """One grid step = one batch element, one output row-pair (output rows 2i, 2i+1).

    x?_ref : (1, 1, W+2, Cin)  padded input rows i, i+1, i+2
    w_ref  : (2, 2, 3, Cin, 2*Cout)  parity/shift-combined ConvTranspose weights
    b2_ref : (1, 2*Cout)             bias tiled over the two x-parities
    o_ref  : (1, 1, 2, W, 2*Cout)    output row-pair, x-parity packed in the last dim
    """
    rows = (x0_ref[0, 0], x1_ref[0, 0], x2_ref[0, 0])      # each (W+2, Cin)
    wpad = rows[0].shape[0]
    wd = wpad - 2
    b2 = b2_ref[...]                                        # (1, 2*Cout)
    n2c = b2.shape[-1]
    for ry in range(2):                                     # unrolled at trace time
        acc = jnp.zeros((wd, n2c), jnp.float32)
        for dy in range(2):
            r = rows[ry + dy]
            for sx in range(3):
                acc = acc + jnp.dot(r[sx:sx + wd, :], w_ref[ry, dy, sx],
                                    preferred_element_type=jnp.float32)
        o_ref[0, 0, ry, :, :] = acc + b2                    # fused bias epilogue


def _in_lrelu_kernel(x_ref, o_ref):
    """Fused InstanceNorm2d (biased var, eps) + LeakyReLU(0.2) on an (RT, H*W) row tile."""
    x = x_ref[...]
    mean = jnp.mean(x, axis=-1, keepdims=True)
    xc = x - mean
    var = jnp.mean(xc * xc, axis=-1, keepdims=True)
    y = xc * lax.rsqrt(var + IN_EPS)
    o_ref[...] = jnp.where(y >= 0, y, LRELU_SLOPE * y)


# ---------------- Pallas wrappers ----------------

def _build_shift_weights(wt):
    """torch ConvTranspose2d weight (Cin, Cout, 4, 4) -> (2, 2, 3, Cin, 2*Cout) where
       M[ry, dy, sx][:, rx*Cout:(rx+1)*Cout] = wt[:, :, _KTAB[ry][dy], _KTAB[rx][sx-rx]]
       (zero where sx-rx not in {0,1})."""
    cin, cout = wt.shape[0], wt.shape[1]
    m = jnp.zeros((2, 2, 3, cin, 2 * cout), wt.dtype)
    for ry in range(2):
        for dy in range(2):
            for rx in range(2):
                for dx in range(2):
                    sx = rx + dx
                    m = m.at[ry, dy, sx, :, rx * cout:(rx + 1) * cout].set(
                        wt[:, :, _KTAB[ry][dy], _KTAB[rx][dx]])
    return m


def conv_transpose_4x4_s2_p1(x_nhwc, wt, b):
    """ConvTranspose2d(Cin, Cout, 4, stride=2, padding=1, bias=True); NHWC in/out."""
    n, h, w, cin = x_nhwc.shape
    cout = wt.shape[1]
    xp = jnp.pad(x_nhwc, ((0, 0), (1, 1), (1, 1), (0, 0)))          # zero pad H/W by 1
    wm = _build_shift_weights(wt)
    b2 = jnp.tile(b[None, :], (1, 2))                               # (1, 2*Cout)

    def row_spec(off):
        # same padded array, shifted row index: expresses the 1-row halo with no HBM copy
        return pl.BlockSpec((1, 1, w + 2, cin), lambda ni, i: (ni, i + off, 0, 0))

    y = pl.pallas_call(
        _convT_kernel,
        out_shape=jax.ShapeDtypeStruct((n, h, 2, w, 2 * cout), jnp.float32),
        grid=(n, h),
        in_specs=[row_spec(0), row_spec(1), row_spec(2),
                  pl.BlockSpec(wm.shape, lambda ni, i: (0, 0, 0, 0, 0)),
                  pl.BlockSpec(b2.shape, lambda ni, i: (0, 0))],
        out_specs=pl.BlockSpec((1, 1, 2, w, 2 * cout),
                               lambda ni, i: (ni, i, 0, 0, 0)),
        compiler_params=pltpu.CompilerParams(
            dimension_semantics=("parallel", "parallel"),
            vmem_limit_bytes=_VMEM_LIMIT),
    )(xp, xp, xp, wm, b2)
    # (N, H, 2, W, 2*Cout) row-major == (N, 2H, 2W, Cout): pixel shuffle is a free reshape.
    return y.reshape(n, 2 * h, 2 * w, cout)


def instance_norm_lrelu(x2d):
    """x2d: (N*C, H*W). Row-tiled fused InstanceNorm + LeakyReLU (lane-dense H*W last dim)."""
    rows, s = x2d.shape
    rt = 8 if rows % 8 == 0 else rows
    # TODO(synk): for very large H*W, switch to a two-pass (partial-stats) variant so the
    #             spatial axis can be tiled too; here each row tile keeps its full plane.
    return pl.pallas_call(
        _in_lrelu_kernel,
        out_shape=jax.ShapeDtypeStruct((rows, s), x2d.dtype),
        grid=(rows // rt,),
        in_specs=[pl.BlockSpec((rt, s), lambda i: (i, 0))],
        out_specs=pl.BlockSpec((rt, s), lambda i: (i, 0)),
        compiler_params=pltpu.CompilerParams(
            dimension_semantics=("parallel",),
            vmem_limit_bytes=_VMEM_LIMIT),
    )(x2d)


# ---------------- module forward ----------------

def upsample_block_forward(x, params):
    """x: (N, Cin, H, W) NCHW float32.  Returns (N, Cout, 2H, 2W) NCHW."""
    n, cin, h, w = x.shape
    cout = params["w"].shape[1]
    x_nhwc = jnp.transpose(x, (0, 2, 3, 1))                          # NCHW -> NHWC (channels in lanes)
    y_nhwc = conv_transpose_4x4_s2_p1(x_nhwc, params["w"], params["b"])   # (N, 2H, 2W, Cout)
    y_nchw = jnp.transpose(y_nhwc, (0, 3, 1, 2))                     # required NCHW output layout
    z = instance_norm_lrelu(y_nchw.reshape(n * cout, 4 * h * w))     # fused norm + lrelu
    return z.reshape(n, cout, 2 * h, 2 * w)


# ---------------- pure-JAX reference (for correctness check) ----------------

def upsample_block_reference(x, params):
    wt, b = params["w"], params["b"]
    k = wt.shape[2]
    wc = jnp.transpose(wt, (1, 0, 2, 3))[:, :, ::-1, ::-1]           # (Cout, Cin, k, k), flipped
    pad = k - 1 - 1                                                  # k - 1 - padding = 2
    y = lax.conv_general_dilated(
        x, wc, window_strides=(1, 1), padding=[(pad, pad), (pad, pad)],
        lhs_dilation=(2, 2), rhs_dilation=(1, 1),
        dimension_numbers=("NCHW", "OIHW", "NCHW"))
    y = y + b[None, :, None, None]
    mean = jnp.mean(y, axis=(2, 3), keepdims=True)
    var = jnp.mean((y - mean) ** 2, axis=(2, 3), keepdims=True)
    yn = (y - mean) * lax.rsqrt(var + IN_EPS)
    return jnp.where(yn >= 0, yn, LRELU_SLOPE * yn)


# ---------------- demo ----------------

if __name__ == "__main__":
    key = jax.random.PRNGKey(0)
    N, Cin, Cout, H, W = 2, 4, 8, 16, 16
    k = jax.random.split(key, 3)

    x = jax.random.normal(k[0], (N, Cin, H, W), jnp.float32)
    params = {
        # torch ConvTranspose2d weight layout: (in_channels, out_channels, kH, kW)
        "w": jax.random.normal(k[1], (Cin, Cout, 4, 4), jnp.float32) * 0.1,
        "b": jax.random.normal(k[2], (Cout,), jnp.float32) * 0.1,
    }

    out = jax.jit(upsample_block_forward)(x, params)
    jax.block_until_ready(out)
    assert out.shape == (N, Cout, 2 * H, 2 * W), out.shape
    assert bool(jnp.all(jnp.isfinite(out)))

    ref = jax.jit(upsample_block_reference)(x, params)
    jax.block_until_ready(ref)
    assert bool(jnp.allclose(out, ref, rtol=2e-3, atol=2e-3)), float(jnp.max(jnp.abs(out - ref)))

    print("KERNEL_OK")
</pallas_src>

<mosaic_0001>
module attributes {stable_mosaic.version = 11 : i64} {
  func.func @_convT_kernel(%arg0: i32, %arg1: i32, %arg2: memref<1x1x18x4xf32, #tpu.memory_space<vmem>>, %arg3: memref<1x1x18x4xf32, #tpu.memory_space<vmem>>, %arg4: memref<1x1x18x4xf32, #tpu.memory_space<vmem>>, %arg5: memref<2x2x3x4x16xf32, #tpu.memory_space<vmem>>, %arg6: memref<1x16xf32, #tpu.memory_space<vmem>>, %arg7: memref<1x1x2x16x16xf32, #tpu.memory_space<vmem>>) attributes {dimension_semantics = [#tpu.dimension_semantics<parallel>, #tpu.dimension_semantics<parallel>], iteration_bounds = array<i64: 2, 16>, scalar_prefetch = 0 : i64, scratch_operands = 0 : i64, tpu.core_type = #tpu.core_type<tc>, window_params = [{transform_indices = @transform_0, window_bounds = array<i64: 1, 1, 18, 4>}, {transform_indices = @transform_1, window_bounds = array<i64: 1, 1, 18, 4>}, {transform_indices = @transform_2, window_bounds = array<i64: 1, 1, 18, 4>}, {pipeline_mode = #tpu.pipeline_mode<synchronous>, transform_indices = @transform_3, window_bounds = array<i64: 2, 2, 3, 4, 16>}, {pipeline_mode = #tpu.pipeline_mode<synchronous>, transform_indices = @transform_4, window_bounds = array<i64: 1, 16>}, {transform_indices = @transform_5, window_bounds = array<i64: 1, 1, 2, 16, 16>}]} {
    %c0 = arith.constant 0 : index
    %c0_0 = arith.constant 0 : index
    %c0_1 = arith.constant 0 : index
    %c0_2 = arith.constant 0 : index
    %0 = vector.load %arg2[%c0, %c0_0, %c0_1, %c0_2] : memref<1x1x18x4xf32, #tpu.memory_space<vmem>>, vector<1x1x18x4xf32>
    %1 = vector.shape_cast %0 : vector<1x1x18x4xf32> to vector<18x4xf32>
    %c0_3 = arith.constant 0 : index
    %c0_4 = arith.constant 0 : index
    %c0_5 = arith.constant 0 : index
    %c0_6 = arith.constant 0 : index
    %2 = vector.load %arg3[%c0_3, %c0_4, %c0_5, %c0_6] : memref<1x1x18x4xf32, #tpu.memory_space<vmem>>, vector<1x1x18x4xf32>
    %3 = vector.shape_cast %2 : vector<1x1x18x4xf32> to vector<18x4xf32>
    %c0_7 = arith.constant 0 : index
    %c0_8 = arith.constant 0 : index
    %c0_9 = arith.constant 0 : index
    %c0_10 = arith.constant 0 : index
    %4 = vector.load %arg4[%c0_7, %c0_8, %c0_9, %c0_10] : memref<1x1x18x4xf32, #tpu.memory_space<vmem>>, vector<1x1x18x4xf32>
    %5 = vector.shape_cast %4 : vector<1x1x18x4xf32> to vector<18x4xf32>
    %c0_11 = arith.constant 0 : index
    %c0_12 = arith.constant 0 : index
    %6 = vector.load %arg6[%c0_11, %c0_12] : memref<1x16xf32, #tpu.memory_space<vmem>>, vector<1x16xf32>
    %cst = arith.constant 0.000000e+00 : f32
    %7 = vector.broadcast %cst : f32 to vector<16x16xf32>
    %8 = vector.extract_strided_slice %1 {offsets = [0, 0], sizes = [16, 4], strides = [1, 1]} : vector<18x4xf32> to vector<16x4xf32>
    %c0_13 = arith.constant 0 : index
    %c0_14 = arith.constant 0 : index
    %c0_15 = arith.constant 0 : index
    %c0_16 = arith.constant 0 : index
    %c0_17 = arith.constant 0 : index
    %9 = vector.load %arg5[%c0_13, %c0_14, %c0_15, %c0_16, %c0_17] : memref<2x2x3x4x16xf32, #tpu.memory_space<vmem>>, vector<1x1x1x4x16xf32>
    %10 = vector.shape_cast %9 : vector<1x1x1x4x16xf32> to vector<4x16xf32>
    %cst_18 = arith.constant dense<0.000000e+00> : vector<16x16xf32>
    %11 = tpu.matmul %8, %10, %cst_18 {dimension_numbers = #tpu.dot_dimension_numbers<[1], [0], [0], [1], [0, 0, 1, 1], [], []>} : vector<16x4xf32>, vector<4x16xf32>, vector<16x16xf32> -> vector<16x16xf32>
    %12 = arith.addf %7, %11 : vector<16x16xf32>
    %13 = vector.extract_strided_slice %1 {offsets = [1, 0], sizes = [16, 4], strides = [1, 1]} : vector<18x4xf32> to vector<16x4xf32>
    %c0_19 = arith.constant 0 : index
    %c0_20 = arith.constant 0 : index
    %c1 = arith.constant 1 : index
    %c0_21 = arith.constant 0 : index
    %c0_22 = arith.constant 0 : index
    %14 = vector.load %arg5[%c0_19, %c0_20, %c1, %c0_21, %c0_22] : memref<2x2x3x4x16xf32, #tpu.memory_space<vmem>>, vector<1x1x1x4x16xf32>
    %15 = vector.shape_cast %14 : vector<1x1x1x4x16xf32> to vector<4x16xf32>
    %cst_23 = arith.constant dense<0.000000e+00> : vector<16x16xf32>
    %16 = tpu.matmul %13, %15, %cst_23 {dimension_numbers = #tpu.dot_dimension_numbers<[1], [0], [0], [1], [0, 0, 1, 1], [], []>} : vector<16x4xf32>, vector<4x16xf32>, vector<16x16xf32> -> vector<16x16xf32>
    %17 = arith.addf %12, %16 : vector<16x16xf32>
    %18 = vector.extract_strided_slice %1 {offsets = [2, 0], sizes = [16, 4], strides = [1, 1]} : vector<18x4xf32> to vector<16x4xf32>
    %c0_24 = arith.constant 0 : index
    %c0_25 = arith.constant 0 : index
    %c2 = arith.constant 2 : index
    %c0_26 = arith.constant 0 : index
    %c0_27 = arith.constant 0 : index
    %19 = vector.load %arg5[%c0_24, %c0_25, %c2, %c0_26, %c0_27] : memref<2x2x3x4x16xf32, #tpu.memory_space<vmem>>, vector<1x1x1x4x16xf32>
    %20 = vector.shape_cast %19 : vector<1x1x1x4x16xf32> to vector<4x16xf32>
    %cst_28 = arith.constant dense<0.000000e+00> : vector<16x16xf32>
    %21 = tpu.matmul %18, %20, %cst_28 {dimension_numbers = #tpu.dot_dimension_numbers<[1], [0], [0], [1], [0, 0, 1, 1], [], []>} : vector<16x4xf32>, vector<4x16xf32>, vector<16x16xf32> -> vector<16x16xf32>
    %22 = arith.addf %17, %21 : vector<16x16xf32>
    %23 = vector.extract_strided_slice %3 {offsets = [0, 0], sizes = [16, 4], strides = [1, 1]} : vector<18x4xf32> to vector<16x4xf32>
    %c0_29 = arith.constant 0 : index
    %c1_30 = arith.constant 1 : index
    %c0_31 = arith.constant 0 : index
    %c0_32 = arith.constant 0 : index
    %c0_33 = arith.constant 0 : index
    %24 = vector.load %arg5[%c0_29, %c1_30, %c0_31, %c0_32, %c0_33] : memref<2x2x3x4x16xf32, #tpu.memory_space<vmem>>, vector<1x1x1x4x16xf32>
    %25 = vector.shape_cast %24 : vector<1x1x1x4x16xf32> to vector<4x16xf32>
    %cst_34 = arith.constant dense<0.000000e+00> : vector<16x16xf32>
    %26 = tpu.matmul %23, %25, %cst_34 {dimension_numbers = #tpu.dot_dimension_numbers<[1], [0], [0], [1], [0, 0, 1, 1], [], []>} : vector<16x4xf32>, vector<4x16xf32>, vector<16x16xf32> -> vector<16x16xf32>
    %27 = arith.addf %22, %26 : vector<16x16xf32>
    %28 = vector.extract_strided_slice %3 {offsets = [1, 0], sizes = [16, 4], strides = [1, 1]} : vector<18x4xf32> to vector<16x4xf32>
    %c0_35 = arith.constant 0 : index
    %c1_36 = arith.constant 1 : index
    %c1_37 = arith.constant 1 : index
    %c0_38 = arith.constant 0 : index
    %c0_39 = arith.constant 0 : index
    %29 = vector.load %arg5[%c0_35, %c1_36, %c1_37, %c0_38, %c0_39] : memref<2x2x3x4x16xf32, #tpu.memory_space<vmem>>, vector<1x1x1x4x16xf32>
    %30 = vector.shape_cast %29 : vector<1x1x1x4x16xf32> to vector<4x16xf32>
    %cst_40 = arith.constant dense<0.000000e+00> : vector<16x16xf32>
    %31 = tpu.matmul %28, %30, %cst_40 {dimension_numbers = #tpu.dot_dimension_numbers<[1], [0], [0], [1], [0, 0, 1, 1], [], []>} : vector<16x4xf32>, vector<4x16xf32>, vector<16x16xf32> -> vector<16x16xf32>
    %32 = arith.addf %27, %31 : vector<16x16xf32>
    %33 = vector.extract_strided_slice %3 {offsets = [2, 0], sizes = [16, 4], strides = [1, 1]} : vector<18x4xf32> to vector<16x4xf32>
    %c0_41 = arith.constant 0 : index
    %c1_42 = arith.constant 1 : index
    %c2_43 = arith.constant 2 : index
    %c0_44 = arith.constant 0 : index
    %c0_45 = arith.constant 0 : index
    %34 = vector.load %arg5[%c0_41, %c1_42, %c2_43, %c0_44, %c0_45] : memref<2x2x3x4x16xf32, #tpu.memory_space<vmem>>, vector<1x1x1x4x16xf32>
    %35 = vector.shape_cast %34 : vector<1x1x1x4x16xf32> to vector<4x16xf32>
    %cst_46 = arith.constant dense<0.000000e+00> : vector<16x16xf32>
    %36 = tpu.matmul %33, %35, %cst_46 {dimension_numbers = #tpu.dot_dimension_numbers<[1], [0], [0], [1], [0, 0, 1, 1], [], []>} : vector<16x4xf32>, vector<4x16xf32>, vector<16x16xf32> -> vector<16x16xf32>
    %37 = arith.addf %32, %36 : vector<16x16xf32>
    %38 = vector.broadcast %6 : vector<1x16xf32> to vector<16x16xf32>
    %39 = arith.addf %37, %38 : vector<16x16xf32>
    %c0_47 = arith.constant 0 : index
    %c0_48 = arith.constant 0 : index
    %c0_49 = arith.constant 0 : index
    %c0_50 = arith.constant 0 : index
    %c0_51 = arith.constant 0 : index
    %40 = vector.load %arg7[%c0_47, %c0_48, %c0_49, %c0_50, %c0_51] : memref<1x1x2x16x16xf32, #tpu.memory_space<vmem>>, vector<1x1x1x16x16xf32>
    %41 = vector.shape_cast %40 : vector<1x1x1x16x16xf32> to vector<16x16xf32>
    %42 = vector.shape_cast %39 : vector<16x16xf32> to vector<1x1x1x16x16xf32>
    tpu.vector_store %arg7[%c0_47, %c0_48, %c0_49, %c0_50, %c0_51], %42 {strides = array<i32>} : memref<1x1x2x16x16xf32, #tpu.memory_space<vmem>>, vector<1x1x1x16x16xf32>,
    %cst_52 = arith.constant 0.000000e+00 : f32
    %43 = vector.broadcast %cst_52 : f32 to vector<16x16xf32>
    %44 = vector.extract_strided_slice %3 {offsets = [0, 0], sizes = [16, 4], strides = [1, 1]} : vector<18x4xf32> to vector<16x4xf32>
    %c1_53 = arith.constant 1 : index
    %c0_54 = arith.constant 0 : index
    %c0_55 = arith.constant 0 : index
    %c0_56 = arith.constant 0 : index
    %c0_57 = arith.constant 0 : index
    %45 = vector.load %arg5[%c1_53, %c0_54, %c0_55, %c0_56, %c0_57] : memref<2x2x3x4x16xf32, #tpu.memory_space<vmem>>, vector<1x1x1x4x16xf32>
    %46 = vector.shape_cast %45 : vector<1x1x1x4x16xf32> to vector<4x16xf32>
    %cst_58 = arith.constant dense<0.000000e+00> : vector<16x16xf32>
    %47 = tpu.matmul %44, %46, %cst_58 {dimension_numbers = #tpu.dot_dimension_numbers<[1], [0], [0], [1], [0, 0, 1, 1], [], []>} : vector<16x4xf32>, vector<4x16xf32>, vector<16x16xf32> -> vector<16x16xf32>
    %48 = arith.addf %43, %47 : vector<16x16xf32>
    %49 = vector.extract_strided_slice %3 {offsets = [1, 0], sizes = [16, 4], strides = [1, 1]} : vector<18x4xf32> to vector<16x4xf32>
    %c1_59 = arith.constant 1 : index
    %c0_60 = arith.constant 0 : index
    %c1_61 = arith.constant 1 : index
    %c0_62 = arith.constant 0 : index
    %c0_63 = arith.constant 0 : index
    %50 = vector.load %arg5[%c1_59, %c0_60, %c1_61, %c0_62, %c0_63] : memref<2x2x3x4x16xf32, #tpu.memory_space<vmem>>, vector<1x1x1x4x16xf32>
    %51 = vector.shape_cast %50 : vector<1x1x1x4x16xf32> to vector<4x16xf32>
    %cst_64 = arith.constant dense<0.000000e+00> : vector<16x16xf32>
    %52 = tpu.matmul %49, %51, %cst_64 {dimension_numbers = #tpu.dot_dimension_numbers<[1], [0], [0], [1], [0, 0, 1, 1], [], []>} : vector<16x4xf32>, vector<4x16xf32>, vector<16x16xf32> -> vector<16x16xf32>
    %53 = arith.addf %48, %52 : vector<16x16xf32>
    %54 = vector.extract_strided_slice %3 {offsets = [2, 0], sizes = [16, 4], strides = [1, 1]} : vector<18x4xf32> to vector<16x4xf32>
    %c1_65 = arith.constant 1 : index
    %c0_66 = arith.constant 0 : index
    %c2_67 = arith.constant 2 : index
    %c0_68 = arith.constant 0 : index
    %c0_69 = arith.constant 0 : index
    %55 = vector.load %arg5[%c1_65, %c0_66, %c2_67, %c0_68, %c0_69] : memref<2x2x3x4x16xf32, #tpu.memory_space<vmem>>, vector<1x1x1x4x16xf32>
    %56 = vector.shape_cast %55 : vector<1x1x1x4x16xf32> to vector<4x16xf32>
    %cst_70 = arith.constant dense<0.000000e+00> : vector<16x16xf32>
    %57 = tpu.matmul %54, %56, %cst_70 {dimension_numbers = #tpu.dot_dimension_numbers<[1], [0], [0], [1], [0, 0, 1, 1], [], []>} : vector<16x4xf32>, vector<4x16xf32>, vector<16x16xf32> -> vector<16x16xf32>
    %58 = arith.addf %53, %57 : vector<16x16xf32>
    %59 = vector.extract_strided_slice %5 {offsets = [0, 0], sizes = [16, 4], strides = [1, 1]} : vector<18x4xf32> to vector<16x4xf32>
    %c1_71 = arith.constant 1 : index
    %c1_72 = arith.constant 1 : index
    %c0_73 = arith.constant 0 : index
    %c0_74 = arith.constant 0 : index
    %c0_75 = arith.constant 0 : index
    %60 = vector.load %arg5[%c1_71, %c1_72, %c0_73, %c0_74, %c0_75] : memref<2x2x3x4x16xf32, #tpu.memory_space<vmem>>, vector<1x1x1x4x16xf32>
    %61 = vector.shape_cast %60 : vector<1x1x1x4x16xf32> to vector<4x16xf32>
    %cst_76 = arith.constant dense<0.000000e+00> : vector<16x16xf32>
    %62 = tpu.matmul %59, %61, %cst_76 {dimension_numbers = #tpu.dot_dimension_numbers<[1], [0], [0], [1], [0, 0, 1, 1], [], []>} : vector<16x4xf32>, vector<4x16xf32>, vector<16x16xf32> -> vector<16x16xf32>
    %63 = arith.addf %58, %62 : vector<16x16xf32>
    %64 = vector.extract_strided_slice %5 {offsets = [1, 0], sizes = [16, 4], strides = [1, 1]} : vector<18x4xf32> to vector<16x4xf32>
    %c1_77 = arith.constant 1 : index
    %c1_78 = arith.constant 1 : index
    %c1_79 = arith.constant 1 : index
    %c0_80 = arith.constant 0 : index
    %c0_81 = arith.constant 0 : index
    %65 = vector.load %arg5[%c1_77, %c1_78, %c1_79, %c0_80, %c0_81] : memref<2x2x3x4x16xf32, #tpu.memory_space<vmem>>, vector<1x1x1x4x16xf32>
    %66 = vector.shape_cast %65 : vector<1x1x1x4x16xf32> to vector<4x16xf32>
    %cst_82 = arith.constant dense<0.000000e+00> : vector<16x16xf32>
    %67 = tpu.matmul %64, %66, %cst_82 {dimension_numbers = #tpu.dot_dimension_numbers<[1], [0], [0], [1], [0, 0, 1, 1], [], []>} : vector<16x4xf32>, vector<4x16xf32>, vector<16x16xf32> -> vector<16x16xf32>
    %68 = arith.addf %63, %67 : vector<16x16xf32>
    %69 = vector.extract_strided_slice %5 {offsets = [2, 0], sizes = [16, 4], strides = [1, 1]} : vector<18x4xf32> to vector<16x4xf32>
    %c1_83 = arith.constant 1 : index
    %c1_84 = arith.constant 1 : index
    %c2_85 = arith.constant 2 : index
    %c0_86 = arith.constant 0 : index
    %c0_87 = arith.constant 0 : index
    %70 = vector.load %arg5[%c1_83, %c1_84, %c2_85, %c0_86, %c0_87] : memref<2x2x3x4x16xf32, #tpu.memory_space<vmem>>, vector<1x1x1x4x16xf32>
    %71 = vector.shape_cast %70 : vector<1x1x1x4x16xf32> to vector<4x16xf32>
    %cst_88 = arith.constant dense<0.000000e+00> : vector<16x16xf32>
    %72 = tpu.matmul %69, %71, %cst_88 {dimension_numbers = #tpu.dot_dimension_numbers<[1], [0], [0], [1], [0, 0, 1, 1], [], []>} : vector<16x4xf32>, vector<4x16xf32>, vector<16x16xf32> -> vector<16x16xf32>
    %73 = arith.addf %68, %72 : vector<16x16xf32>
    %74 = vector.broadcast %6 : vector<1x16xf32> to vector<16x16xf32>
    %75 = arith.addf %73, %74 : vector<16x16xf32>
    %c0_89 = arith.constant 0 : index
    %c0_90 = arith.constant 0 : index
    %c1_91 = arith.constant 1 : index
    %c0_92 = arith.constant 0 : index
    %c0_93 = arith.constant 0 : index
    %76 = vector.load %arg7[%c0_89, %c0_90, %c1_91, %c0_92, %c0_93] : memref<1x1x2x16x16xf32, #tpu.memory_space<vmem>>, vector<1x1x1x16x16xf32>
    %77 = vector.shape_cast %76 : vector<1x1x1x16x16xf32> to vector<16x16xf32>
    %78 = vector.shape_cast %75 : vector<16x16xf32> to vector<1x1x1x16x16xf32>
    tpu.vector_store %arg7[%c0_89, %c0_90, %c1_91, %c0_92, %c0_93], %78 {strides = array<i32>} : memref<1x1x2x16x16xf32, #tpu.memory_space<vmem>>, vector<1x1x1x16x16xf32>,
    return
  }
  func.func @transform_0(%arg0: i32, %arg1: i32) -> (i32, i32, i32, i32) {
    %c0_i32 = arith.constant 0 : i32
    %0 = arith.addi %arg1, %c0_i32 : i32
    %c0_i32_0 = arith.constant 0 : i32
    %c0_i32_1 = arith.constant 0 : i32
    %c0_i32_2 = arith.constant 0 : i32
    return %arg0, %0, %c0_i32_0, %c0_i32_1 : i32, i32, i32, i32
  }
  func.func @transform_1(%arg0: i32, %arg1: i32) -> (i32, i32, i32, i32) {
    %c1_i32 = arith.constant 1 : i32
    %0 = arith.addi %arg1, %c1_i32 : i32
    %c0_i32 = arith.constant 0 : i32
    %c0_i32_0 = arith.constant 0 : i32
    %c0_i32_1 = arith.constant 0 : i32
    return %arg0, %0, %c0_i32, %c0_i32_0 : i32, i32, i32, i32
  }
  func.func @transform_2(%arg0: i32, %arg1: i32) -> (i32, i32, i32, i32) {
    %c2_i32 = arith.constant 2 : i32
    %0 = arith.addi %arg1, %c2_i32 : i32
    %c0_i32 = arith.constant 0 : i32
    %c0_i32_0 = arith.constant 0 : i32
    %c0_i32_1 = arith.constant 0 : i32
    return %arg0, %0, %c0_i32, %c0_i32_0 : i32, i32, i32, i32
  }
  func.func @transform_3(%arg0: i32, %arg1: i32) -> (i32, i32, i32, i32, i32) {
    %c0_i32 = arith.constant 0 : i32
    %c0_i32_0 = arith.constant 0 : i32
    %c0_i32_1 = arith.constant 0 : i32
    %c0_i32_2 = arith.constant 0 : i32
    %c0_i32_3 = arith.constant 0 : i32
    %c0_i32_4 = arith.constant 0 : i32
    return %c0_i32, %c0_i32_0, %c0_i32_1, %c0_i32_2, %c0_i32_3 : i32, i32, i32, i32, i32
  }
  func.func @transform_4(%arg0: i32, %arg1: i32) -> (i32, i32) {
    %c0_i32 = arith.constant 0 : i32
    %c0_i32_0 = arith.constant 0 : i32
    %c0_i32_1 = arith.constant 0 : i32
    return %c0_i32, %c0_i32_0 : i32, i32
  }
  func.func @transform_5(%arg0: i32, %arg1: i32) -> (i32, i32, i32, i32, i32) {
    %c0_i32 = arith.constant 0 : i32
    %c0_i32_0 = arith.constant 0 : i32
    %c0_i32_1 = arith.constant 0 : i32
    %c0_i32_2 = arith.constant 0 : i32
    return %arg0, %arg1, %c0_i32, %c0_i32_0, %c0_i32_1 : i32, i32, i32, i32, i32
  }
}

module attributes {stable_mosaic.version = 11 : i64} {
  func.func @_in_lrelu_kernel(%arg0: i32, %arg1: memref<8x1024xf32, #tpu.memory_space<vmem>>, %arg2: memref<8x1024xf32, #tpu.memory_space<vmem>>) attributes {dimension_semantics = [#tpu.dimension_semantics<parallel>], iteration_bounds = array<i64: 2>, scalar_prefetch = 0 : i64, scratch_operands = 0 : i64, tpu.core_type = #tpu.core_type<tc>, window_params = [{transform_indices = @transform_0, window_bounds = array<i64: 8, 1024>}, {transform_indices = @transform_1, window_bounds = array<i64: 8, 1024>}]} {
    %c0 = arith.constant 0 : index
    %c0_0 = arith.constant 0 : index
    %0 = vector.load %arg1[%c0, %c0_0] : memref<8x1024xf32, #tpu.memory_space<vmem>>, vector<8x1024xf32>
    %cst = arith.constant dense<0.000000e+00> : vector<8xf32>
    %1 = vector.multi_reduction <add>, %0, %cst [1] : vector<8x1024xf32> to vector<8xf32>
    %2 = vector.shape_cast %1 : vector<8xf32> to vector<8x1xf32>
    %cst_1 = arith.constant 1.024000e+03 : f32
    %3 = vector.broadcast %cst_1 : f32 to vector<8x1xf32>
    %4 = arith.divf %2, %3 : vector<8x1xf32>
    %5 = vector.broadcast %4 : vector<8x1xf32> to vector<8x1024xf32>
    %6 = arith.subf %0, %5 : vector<8x1024xf32>
    %7 = arith.mulf %6, %6 : vector<8x1024xf32>
    %cst_2 = arith.constant dense<0.000000e+00> : vector<8xf32>
    %8 = vector.multi_reduction <add>, %7, %cst_2 [1] : vector<8x1024xf32> to vector<8xf32>
    %9 = vector.shape_cast %8 : vector<8xf32> to vector<8x1xf32>
    %cst_3 = arith.constant 1.024000e+03 : f32
    %10 = vector.broadcast %cst_3 : f32 to vector<8x1xf32>
    %11 = arith.divf %9, %10 : vector<8x1xf32>
    %cst_4 = arith.constant 9.99999974E-6 : f32
    %12 = vector.broadcast %cst_4 : f32 to vector<8x1xf32>
    %13 = arith.addf %11, %12 : vector<8x1xf32>
    %14 = math.rsqrt %13 : vector<8x1xf32>
    %15 = vector.broadcast %14 : vector<8x1xf32> to vector<8x1024xf32>
    %16 = arith.mulf %6, %15 : vector<8x1024xf32>
    %cst_5 = arith.constant 0.000000e+00 : f32
    %17 = vector.broadcast %cst_5 : f32 to vector<8x1024xf32>
    %18 = arith.cmpf oge, %16, %17 : vector<8x1024xf32>
    %cst_6 = arith.constant 2.000000e-01 : f32
    %19 = vector.broadcast %cst_6 : f32 to vector<8x1024xf32>
    %20 = arith.mulf %19, %16 : vector<8x1024xf32>
    %21 = arith.select %18, %16, %20 : vector<8x1024xi1>, vector<8x1024xf32>
    %c0_7 = arith.constant 0 : index
    %c0_8 = arith.constant 0 : index
    %22 = vector.load %arg2[%c0_7, %c0_8] : memref<8x1024xf32, #tpu.memory_space<vmem>>, vector<8x1024xf32>
    tpu.vector_store %arg2[%c0_7, %c0_8], %21 {strides = array<i32>} : memref<8x1024xf32, #tpu.memory_space<vmem>>, vector<8x1024xf32>,
    return
  }
  func.func @transform_0(%arg0: i32) -> (i32, i32) {
    %c0_i32 = arith.constant 0 : i32
    %c0_i32_0 = arith.constant 0 : i32
    return %arg0, %c0_i32 : i32, i32
  }
  func.func @transform_1(%arg0: i32) -> (i32, i32) {
    %c0_i32 = arith.constant 0 : i32
    %c0_i32_0 = arith.constant 0 : i32
    return %arg0, %c0_i32 : i32, i32
  }
}

</mosaic_0001>

<bundles_post_ra>
// kernel: upsample_block_forward.3
= control target key start
LH: loop header
LB: loop body
LE: loop exit
PB: predicated region body
PF: predicated region fallthrough
CT: control target
= control target key end

     0   :  { %s300_s6 = smov 0   ;;  %s332_s0 = inlined_call_operand.vmem [shape: f32[16,1024], index: 0, kind: input, shape index: {}]   ;;  %s333_s1 = inlined_call_operand.vmem [shape: f32[16,1024], index: 1, kind: output, shape index: {}]  }
   0x1 LB: > { %s259_s7 = sadd.s32 4294967295, %s288_s6   ;;  %p263_p0 = scmp.ge.s32.totalorder %s288_s6, 1  ;;  %s288_s6 = sphi %s300_s6, %s11_s6  }
   0x2   : > { %p87_p1 = scmp.lt.s32.totalorder %s288_s6, 3 }
   0x4   : > { %p88_p2 = pnand %p263_p0, %p87_p1 }
   0x5   : > { %p107_p3 = scmp.lt.s32.totalorder (!%p88_p2), %s259_s7, 1 }
   0x6   : > { %91 = sbr.rel (%p88_p2) target bundleno = 362 (0x16a), region = 24 }
   0xd   : > { %s335_s7 = smov (!%p107_p3, %s259_s7), 1 }
   0xe   : > { %s270_s8 = sshll.u32 %s335_s7, 6 }
   0xf   : > { %s111_s11 = scalar_lea.vmem %s332_s0, %s270_s8  ;;  %s116_s14 = scalar_lea.vmem %s333_s1, %s270_s8 }
  0x10   : > { %v117_v0 = vld [vmem:[%s111_s11] sm:$0xff]  ;;  %v118_v1 = vld [vmem:[%s111_s11 + $0x8] sm:$0xff]  ;;  %v119_v2 = vld [vmem:[%s111_s11 + $0x10] sm:$0xff] }
  0x11   : > { %v125_v3 = vadd.f32 %v118_v1, %v117_v0  ;;  %v120_v4 = vld [vmem:[%s111_s11 + $0x18] sm:$0xff]  ;;  %v121_v6 = vld [vmem:[%s111_s11 + $0x20] sm:$0xff]  ;;  %v122_v8 = vld [vmem:[%s111_s11 + $0x28] sm:$0xff] }
  0x12   : > { %v123_v10 = vld [vmem:[%s111_s11 + $0x30] sm:$0xff]  ;;  %v124_v12 = vld [vmem:[%s111_s11 + $0x38] sm:$0xff] }
  0x13   : > { %v126_v5 = vadd.f32 %v125_v3, %v119_v2 }
  0x15   : > { %v127_v7 = vadd.f32 %v126_v5, %v120_v4 }
  0x17   : > { %v128_v9 = vadd.f32 %v127_v7, %v121_v6 }
  0x19   : > { %v129_v11 = vadd.f32 %v128_v9, %v122_v8 }
  0x1b   : > { %v130_v13 = vadd.f32 %v129_v11, %v123_v10 }
  0x1d   : > { %v131_v14 = vadd.f32 %v130_v13, %v124_v12 }
  0x1f   : > { %132 = vadd.xlane.f32.xlu0 %v131_v14 }
  0xac   : > { %v133_v15 = vpop.xlane.xlu0 %132 }
  0xad   : > { %v135_v16 = vmul.f32 0.0009765625, %v133_v15 }
  0xaf   : > { %v136_v17 = vsub.f32 %v117_v0, %v135_v16  ;;  %v137_v18 = vsub.f32 %v118_v1, %v135_v16  ;;  %v138_v19 = vsub.f32 %v119_v2, %v135_v16  ;;  %v139_v20 = vsub.f32 %v120_v4, %v135_v16 }
  0xb0   : > { %v140_v23 = vsub.f32 %v121_v6, %v135_v16  ;;  %v141_v26 = vsub.f32 %v122_v8, %v135_v16  ;;  %v142_v29 = vsub.f32 %v123_v10, %v135_v16  ;;  %v143_v32 = vsub.f32 %v124_v12, %v135_v16 }
  0xb1   : > { %v144_v21 = vmul.f32 %v136_v17, %v136_v17  ;;  %v145_v22 = vmul.f32 %v137_v18, %v137_v18  ;;  %v146_v24 = vmul.f32 %v138_v19, %v138_v19  ;;  %v147_v27 = vmul.f32 %v139_v20, %v139_v20 }
  0xb2   : > { %v148_v30 = vmul.f32 %v140_v23, %v140_v23  ;;  %v149_v33 = vmul.f32 %v141_v26, %v141_v26  ;;  %v150_v35 = vmul.f32 %v142_v29, %v142_v29  ;;  %v151_v37 = vmul.f32 %v143_v32, %v143_v32 }
  0xb3   : > { %v152_v25 = vadd.f32 %v145_v22, %v144_v21 }
  0xb5   : > { %v153_v28 = vadd.f32 %v152_v25, %v146_v24 }
  0xb7   : > { %v154_v31 = vadd.f32 %v153_v28, %v147_v27 }
  0xb9   : > { %v155_v34 = vadd.f32 %v154_v31, %v148_v30 }
  0xbb   : > { %v156_v36 = vadd.f32 %v155_v34, %v149_v33 }
  0xbd   : > { %v157_v38 = vadd.f32 %v156_v36, %v150_v35 }
  0xbf   : > { %v158_v39 = vadd.f32 %v157_v38, %v151_v37 }
  0xc1   : > { %159 = vadd.xlane.f32.xlu0 %v158_v39 }
 0x14e   : > { %v160_v40 = vpop.xlane.xlu0 %159 }
 0x14f   : > { %v161_v41 = vmul.f32 0.0009765625, %v160_v40 }
 0x151   : > { %v162_v42 = vadd.f32 1e-05, %v161_v41 }
 0x153   : > { %280 = vrsqrt.f32 %v162_v42 }
 0x15d   : > { %v281_v43 = vpop.eup %280 }
 0x15e   : > { %v164_v44 = vmul.f32 %v281_v43, %v136_v17  ;;  %v165_v45 = vmul.f32 %v281_v43, %v137_v18  ;;  %v166_v46 = vmul.f32 %v281_v43, %v138_v19  ;;  %v167_v47 = vmul.f32 %v281_v43, %v139_v20 }
 0x15f   : > { %v168_v48 = vmul.f32 %v281_v43, %v140_v23  ;;  %v169_v49 = vmul.f32 %v281_v43, %v141_v26  ;;  %v170_v50 = vmul.f32 %v281_v43, %v142_v29  ;;  %v171_v51 = vmul.f32 %v281_v43, %v143_v32 }
 0x160   : > { %vm172_vm0 = vcmp.ge.f32.partialorder %v164_v44, 0.0  ;;  %vm173_vm1 = vcmp.ge.f32.partialorder %v165_v45, 0.0  ;;  %vm174_vm2 = vcmp.ge.f32.partialorder %v166_v46, 0.0  ;;  %vm175_vm3 = vcmp.ge.f32.partialorder %v167_v47, 0.0 }
 0x161   : > { %vm176_vm4 = vcmp.ge.f32.partialorder %v168_v48, 0.0  ;;  %vm177_vm5 = vcmp.ge.f32.partialorder %v169_v49, 0.0  ;;  %vm178_vm6 = vcmp.ge.f32.partialorder %v170_v50, 0.0  ;;  %vm179_vm7 = vcmp.ge.f32.partialorder %v171_v51, 0.0 }
 0x162   : > { %v180_v52 = vmul.f32 0.2, %v164_v44  ;;  %v181_v53 = vmul.f32 0.2, %v165_v45  ;;  %v182_v54 = vmul.f32 0.2, %v166_v46 }
 0x163   : > { %v183_v55 = vmul.f32 0.2, %v167_v47  ;;  %v184_v56 = vmul.f32 0.2, %v168_v48  ;;  %v185_v57 = vmul.f32 0.2, %v169_v49 }
 0x164   : > { %v186_v58 = vmul.f32 0.2, %v170_v50  ;;  %v187_v59 = vmul.f32 0.2, %v171_v51  ;;  %v188_v60 = vsel %vm172_vm0, %v164_v44, %v180_v52  ;;  %v189_v61 = vsel %vm173_vm1, %v165_v45, %v181_v53 }
 0x165   : > { %v190_v62 = vsel %vm174_vm2, %v166_v46, %v182_v54  ;;  %v191_v63 = vsel %vm175_vm3, %v167_v47, %v183_v55  ;;  %v192_v0 = vsel %vm176_vm4, %v168_v48, %v184_v56  ;;  %v193_v1 = vsel %vm177_vm5, %v169_v49, %v185_v57  ;;  %196 = vst [vmem:[%s116_s14] sm:$0xff] %v188_v60 }
 0x166   : > { %197 = vst [vmem:[%s116_s14 + $0x8] sm:$0xff] %v189_v61  ;;  %v194_v2 = vsel %vm178_vm6, %v170_v50, %v186_v58  ;;  %v195_v3 = vsel %vm179_vm7, %v171_v51, %v187_v59  ;;  %198 = vst [vmem:[%s116_s14 + $0x10] sm:$0xff] %v190_v62 }
 0x167   : > { %199 = vst [vmem:[%s116_s14 + $0x18] sm:$0xff] %v191_v63  ;;  %200 = vst [vmem:[%s116_s14 + $0x20] sm:$0xff] %v192_v0 }
 0x168   : > { %201 = vst [vmem:[%s116_s14 + $0x28] sm:$0xff] %v193_v1  ;;  %202 = vst [vmem:[%s116_s14 + $0x30] sm:$0xff] %v194_v2 }
 0x169   : > { %203 = vst [vmem:[%s116_s14 + $0x38] sm:$0xff] %v195_v3 }
 0x16a PF: > { %s11_s6 = sadd.s32 1, %s288_s6  }
 0x16b   : > { %p8_p4 = scmp.ge.s32.totalorder %s11_s6, 4  }
 0x16d   :  { %10 = sbr.rel (!%p8_p4) target bundleno = 1 (0x1), region = 54 }

// kernel: upsample_block_forward.2
= control target key start
LH: loop header
LB: loop body
LE: loop exit
PB: predicated region body
PF: predicated region fallthrough
CT: control target
= control target key end

     0   :  { %s1853_s18 = smov 0   ;;  %s1855_s19 = smov 0   ;;  %s2030_s0 = inlined_call_operand.vmem [shape: f32[2,18,18,4], index: 0, kind: input, shape index: {}, may-alias: {0,1,2}]   ;;  %s2031_s1 = inlined_call_operand.vmem [shape: f32[2,18,18,4], index: 1, kind: input, shape index: {}, may-alias: {0,1,2}]   ;;  %s2032_s2 = inlined_call_operand.vmem [shape: f32[2,18,18,4], index: 2, kind: input, shape index: {}, may-alias: {0,1,2}]   ;;  %s2033_s3 = inlined_call_operand.vmem [shape: f32[2,2,3,4,16], index: 3, kind: input, shape index: {}]   ;;  %s2034_s4 = inlined_call_operand.vmem [shape: f32[1,16], index: 4, kind: input, shape index: {}]   ;;  %s2035_s5 = inlined_call_operand.vmem [shape: f32[2,16,2,16,16], index: 5, kind: output, shape index: {}]  }
   0x1   :  { %s1857_s20 = smov 0   ;;  %s1859_s21 = smov 0  }
   0x2   :  { %s1861_s22 = smov 0  }
   0x3 LB: > { %s24_s23 = sadd.s32 1, %s1813_s20  ;;  %s27_s24 = sadd.s32 1, %s1817_s21  ;;  %s1821_s22 = sphi %s1861_s22, %s15_s22   ;;  %s1817_s21 = sphi %s1859_s21, %s2039_s21   ;;  %s1813_s20 = sphi %s1857_s20, %s2038_s20   ;;  %s1809_s19 = sphi %s1855_s19, %s2037_s19   ;;  %s1805_s18 = sphi %s1853_s18, %s2036_s18  }
   0x4   : > { %p25_p0 = scmp.ge.s32.totalorder %s24_s23, 16  ;;  %p1564_p1 = scmp.ge.s32.totalorder %s1821_s22, 1 }
   0x5   : > { %p247_p2 = scmp.lt.s32.totalorder %s1821_s22, 33 }
   0x6   : > { %s2041_s23 = smov (%p25_p0, %s24_s23), 0  ;;  %s2043_s24 = smov (!%p25_p0, %s27_s24), %s1817_s21 }
   0x7   : > { %p248_p3 = pnand %p1564_p1, %p247_p2  ;;  %p29_p4 = scmp.ge.s32.totalorder %s2043_s24, 2 }
   0x8   : > { %v1571_v0 = vld [vmem:[%s2033_s3 + $0x4] sm:$0xf] (!%p248_p3)  ;;  %vm370_vm0 = vcmask (!%p248_p3), 1043456   ;;  %v1596_v1 = vld [vmem:[%s2033_s3 + $0x1c] sm:$0xf] (!%p248_p3)  ;;  %p303_p5 = scmp.lt.s32.totalorder (!%p248_p3), %s1809_s19, 1 }
   0x9   : > { %s2045_s24 = smov (%p29_p4, %s2043_s24), 0  ;;  %251 = sbr.rel (%p248_p3) target bundleno = 287 (0x11f), region = 40 }
   0xa   : > { %1659 = vmatprep.subr.msk.mxu0 (!%p248_p3), %vm370_vm0, %v1571_v0  ;;  %1689 = vmatprep.subr.msk.mxu1 (!%p248_p3), %vm370_vm0, %v1596_v1  ;;  %p305_p6 = scmp.lt.s32.totalorder (!%p248_p3), %s1805_s18, 17  ;;  %v353_v2 = vld [vmem:[%s2033_s3] sm:$0xf] (!%p248_p3)  ;;  %s312_s6 = sadd.s32 (!%p248_p3), 1, %s1805_s18  ;;  %v1595_v3 = vld [vmem:[%s2033_s3 + $0x18] sm:$0xf] (!%p248_p3) }
   0xb   : > { %1660 = vmatpush3.msk.msra.mxu0 (!%p248_p3), %vm370_vm0, %v1571_v0  ;;  %1690 = vmatpush3.msk.msra.mxu1 (!%p248_p3), %vm370_vm0, %v1596_v1  ;;  %p315_p7 = scmp.lt.s32.totalorder (!%p248_p3), %s312_s6, 17  ;;  %s323_s13 = sadd.s32 (!%p248_p3), 2, %s1805_s18  ;;  %vm359_vm1 = vcmask (!%p248_p3), 1046528   ;;  %vm365_vm2 = vcmask (!%p248_p3), 31744   ;;  %v1578_v18 = vld [vmem:[%s2033_s3 + $0x8] sm:$0xf] (!%p248_p3) }
   0xc   : > { %1664 = vmatprep.subr.msk.mxu0 (!%p248_p3), %vm370_vm0, %v353_v2  ;;  %1694 = vmatprep.subr.msk.mxu1 (!%p248_p3), %vm370_vm0, %v1595_v3  ;;  %p326_p8 = scmp.lt.s32.totalorder (!%p248_p3), %s323_s13, 17  ;;  %v1603_v21 = vld [vmem:[%s2033_s3 + $0x20] sm:$0xf] (!%p248_p3)  ;;  %vm533_vm3 = vcmask (!%p248_p3), 1045504   ;;  %v1582_v27 = vld [vmem:[%s2033_s3 + $0xc] sm:$0xf] (!%p248_p3) }
   0xd   : > { %v1607_v30 = vld [vmem:[%s2033_s3 + $0x24] sm:$0xf] (!%p248_p3)  ;;  %v1586_v33 = vld [vmem:[%s2033_s3 + $0x10] sm:$0xf] (!%p248_p3)  ;;  %v1611_v36 = vld [vmem:[%s2033_s3 + $0x28] sm:$0xf] (!%p248_p3) }
   0xe   : > { %v1590_v40 = vld [vmem:[%s2033_s3 + $0x14] sm:$0xf] (!%p248_p3)  ;;  %v1615_v43 = vld [vmem:[%s2033_s3 + $0x2c] sm:$0xf] (!%p248_p3)  ;;  %p336_p9 = scmp.lt.s32.totalorder (!%p248_p3), %s1805_s18, 15  ;;  %vm902_vm4 = vcmask (!%p248_p3), 130048  }
   0xf   : > { %v1594_v51 = vld [vmem:[%s2034_s4] ss:$0 sm:$0xff] (!%p248_p3) }
  0x10   : > { %s2047_s19 = smov (!%p303_p5, %s1809_s19), 1  ;;  %s2049_s6 = smov (!%p315_p7, %s312_s6), 17 }
  0x11   : > { %s306_s9 = scalar_select %p305_p6, %s1805_s18, 17 }
  0x12   : > { %s1909_s10 = smul.u32 54, %s2047_s19  ;;  %s2051_s13 = smov (!%p326_p8, %s323_s13), 17 }
  0x13   : > { %s1739_s11 = smul.u32 3, %s306_s9  ;;  %s2053_s18 = smov (!%p336_p9, %s1805_s18), 15 }
  0x14   : > { %s1741_s15 = smul.u32 3, %s2049_s6 }
  0x15   : > { %s309_s12 = sadd.s32 %s1909_s10, %s1739_s11  ;;  %s1742_s11 = smul.u32 3, %s2051_s13 }
  0x16   : > { %s1565_s14 = sshll.u32 %s309_s12, 3  ;;  %s319_s26 = sadd.s32 %s1741_s15, %s1909_s10 }
  0x17   : > { %s311_s25 = scalar_lea.vmem %s2030_s0, %s1565_s14  ;;  %s1566_s27 = sshll.u32 %s319_s26, 3 }
  0x18   : > { %v343_v4 = vld [vmem:[%s311_s25] sm:$0xff]  ;;  %v344_v5 = vld [vmem:[%s311_s25 + $0x8] sm:$0xff]  ;;  %v345_v6 = vld [vmem:[%s311_s25 + $0x10] sm:$0x3]  ;;  %s321_s30 = scalar_lea.vmem %s2031_s1, %s1566_s27  ;;  %s330_s15 = sadd.s32 %s1742_s11, %s1909_s10 }
  0x19   : > { %v360_v7 = vrot.slane %v343_v4, 1  ;;  %v361_v8 = vrot.slane %v344_v5, 1  ;;  %v363_v9 = vrot.slane %v345_v6, 1  ;;  %v346_v12 = vld [vmem:[%s321_s30] sm:$0xff]  ;;  %v347_v13 = vld [vmem:[%s321_s30 + $0x8] sm:$0xff]  ;;  %v534_v22 = vrot.slane %v343_v4, 2 }
  0x1a   : > { %v348_v14 = vld [vmem:[%s321_s30 + $0x10] sm:$0x3]  ;;  %v714_v15 = vrot.slane %v346_v12, 1  ;;  %v715_v16 = vrot.slane %v347_v13, 1  ;;  %v535_v23 = vrot.slane %v344_v5, 2  ;;  %v805_v24 = vrot.slane %v346_v12, 2 }
  0x1b   : > { %v362_v10 = vsel %vm359_vm1, %v360_v7, %v361_v8  ;;  %v364_v11 = vsel %vm359_vm1, %v361_v8, %v363_v9  ;;  %v717_v17 = vrot.slane %v348_v14, 1  ;;  %v806_v25 = vrot.slane %v347_v13, 2  ;;  %s1567_s17 = sshll.u32 %s330_s15, 3  ;;  %s1568_s11 = sshll.u32 %s2053_s18, 2 }
  0x1c   : > { %1661 = vmatprep.mubr.msk.f32.mxu0 %vm365_vm2, %v362_v10  ;;  %v716_v19 = vsel %vm359_vm1, %v714_v15, %v715_v16  ;;  %v536_v26 = vsel %vm533_vm3, %v534_v22, %v535_v23  ;;  %v537_v28 = vrot.slane %v345_v6, 2  ;;  %v808_v31 = vrot.slane %v348_v14, 2  ;;  %s332_s26 = scalar_lea.vmem %s2032_s2, %s1567_s17  ;;  %s1569_s12 = sshll.u32 %s2047_s19, 6 }
  0x1d   : > { %1662 = vmatmul.mubr.msk.f32.vlgmr.msra.gmra.mrb[0].mxu0 %vm365_vm2, %v364_v11  ;;  %v1930_v20 = vsel %vm359_vm1, %v715_v16, %v717_v17  ;;  %1691 = vmatprep.mubr.msk.f32.mxu1 %vm365_vm2, %v716_v19  ;;  %v807_v29 = vsel %vm533_vm3, %v805_v24, %v806_v25  ;;  %v349_v35 = vld [vmem:[%s332_s26] sm:$0xff]  ;;  %v350_v37 = vld [vmem:[%s332_s26 + $0x8] sm:$0xff]  ;;  %v351_v41 = vld [vmem:[%s332_s26 + $0x10] sm:$0x3]  ;;  %s340_s14 = sadd.s32 %s1569_s12, %s1568_s11 }
  0x1e   : > { %1665 = vmatpush3.msk.msra.mxu0 %vm370_vm0, %v353_v2  ;;  %1666 = vmatprep.mubr.msk.f32.mxu0 %vm365_vm2, %v343_v4  ;;  %v538_v32 = vsel %vm533_vm3, %v535_v23, %v537_v28  ;;  %v809_v34 = vsel %vm533_vm3, %v806_v25, %v808_v31  ;;  %v1238_v38 = vrot.slane %v349_v35, 1  ;;  %v1239_v39 = vrot.slane %v350_v37, 1  ;;  %s1570_s15 = sshll.u32 %s340_s14, 3 }
  0x1f   : > { %1669 = vmatprep.subr.msk.mxu0 %vm370_vm0, %v1578_v18  ;;  %1692 = vmatmul.mubr.msk.f32.vlgmr.msra.gmra.mrb[0].mxu1 %vm365_vm2, %v1930_v20  ;;  %v1241_v44 = vrot.slane %v351_v41, 1  ;;  %v1329_v45 = vrot.slane %v349_v35, 2  ;;  %v1330_v46 = vrot.slane %v350_v37, 2  ;;  %v1332_v49 = vrot.slane %v351_v41, 2  ;;  %s342_s25 = scalar_lea.vmem %s2035_s5, %s1570_s15 }
  0x20   : > { %1695 = vmatpush3.msk.msra.mxu1 %vm370_vm0, %v1595_v3  ;;  %1696 = vmatprep.mubr.msk.f32.mxu1 %vm365_vm2, %v346_v12  ;;  %v1240_v42 = vsel %vm359_vm1, %v1238_v38, %v1239_v39 }
  0x21   : > { %1699 = vmatprep.subr.msk.mxu1 %vm370_vm0, %v1603_v21  ;;  %v1242_v47 = vsel %vm359_vm1, %v1239_v39, %v1241_v44  ;;  %v1331_v48 = vsel %vm533_vm3, %v1329_v45, %v1330_v46  ;;  %v1333_v50 = vsel %vm533_vm3, %v1330_v46, %v1332_v49 }
  0x25   : > { %1667 = vmatmul.mubr.msk.f32.vlgmr.msra.gmra.mrb[0].mxu0 %vm365_vm2, %v344_v5 }
  0x26   : > { %1670 = vmatpush3.msk.msra.mxu0 %vm370_vm0, %v1578_v18  ;;  %1671 = vmatprep.mubr.msk.f32.mxu0 %vm365_vm2, %v536_v26 }
  0x27   : > { %1674 = vmatprep.subr.msk.mxu0 %vm370_vm0, %v1582_v27  ;;  %1697 = vmatmul.mubr.msk.f32.vlgmr.msra.gmra.mrb[0].mxu1 %vm365_vm2, %v347_v13 }
  0x28   : > { %1700 = vmatpush3.msk.msra.mxu1 %vm370_vm0, %v1603_v21  ;;  %1701 = vmatprep.mubr.msk.f32.mxu1 %vm365_vm2, %v807_v29 }
  0x29   : > { %1704 = vmatprep.subr.msk.mxu1 %vm370_vm0, %v1607_v30 }
  0x2d   : > { %1672 = vmatmul.mubr.msk.f32.vlgmr.msra.gmra.mrb[0].mxu0 %vm365_vm2, %v538_v32 }
  0x2e   : > { %1675 = vmatpush3.msk.msra.mxu0 %vm370_vm0, %v1582_v27  ;;  %1676 = vmatprep.mubr.msk.f32.mxu0 %vm365_vm2, %v346_v12 }
  0x2f   : > { %1679 = vmatprep.subr.msk.mxu0 %vm370_vm0, %v1586_v33  ;;  %1702 = vmatmul.mubr.msk.f32.vlgmr.msra.gmra.mrb[0].mxu1 %vm365_vm2, %v809_v34 }
  0x30   : > { %1705 = vmatpush3.msk.msra.mxu1 %vm370_vm0, %v1607_v30  ;;  %1706 = vmatprep.mubr.msk.f32.mxu1 %vm365_vm2, %v349_v35 }
  0x31   : > { %1709 = vmatprep.subr.msk.mxu1 %vm370_vm0, %v1611_v36 }
  0x35   : > { %1677 = vmatmul.mubr.msk.f32.vlgmr.msra.gmra.mrb[0].mxu0 %vm365_vm2, %v347_v13 }
  0x36   : > { %1680 = vmatpush3.msk.msra.mxu0 %vm370_vm0, %v1586_v33  ;;  %1681 = vmatprep.mubr.msk.f32.mxu0 %vm365_vm2, %v716_v19 }
  0x37   : > { %1684 = vmatprep.subr.msk.mxu0 %vm370_vm0, %v1590_v40  ;;  %1707 = vmatmul.mubr.msk.f32.vlgmr.msra.gmra.mrb[0].mxu1 %vm365_vm2, %v350_v37 }
  0x38   : > { %1710 = vmatpush3.msk.msra.mxu1 %vm370_vm0, %v1611_v36  ;;  %1711 = vmatprep.mubr.msk.f32.mxu1 %vm365_vm2, %v1240_v42 }
  0x39   : > { %1714 = vmatprep.subr.msk.mxu1 %vm370_vm0, %v1615_v43 }
  0x3d   : > { %1682 = vmatmul.mubr.msk.f32.vlgmr.msra.gmra.mrb[0].mxu0 %vm365_vm2, %v1930_v20 }
  0x3e   : > { %1685 = vmatpush3.msk.msra.mxu0 %vm370_vm0, %v1590_v40  ;;  %1686 = vmatprep.mubr.msk.f32.mxu0 %vm365_vm2, %v807_v29 }
  0x3f   : > { %1712 = vmatmul.mubr.msk.f32.vlgmr.msra.gmra.mrb[0].mxu1 %vm365_vm2, %v1242_v47 }
  0x40   : > { %1715 = vmatpush3.msk.msra.mxu1 %vm370_vm0, %v1615_v43  ;;  %1716 = vmatprep.mubr.msk.f32.mxu1 %vm365_vm2, %v1331_v48 }
  0x45   : > { %1687 = vmatmul.mubr.msk.f32.vlgmr.msra.gmra.mrb[0].mxu0 %vm365_vm2, %v809_v34 }
  0x47   : > { %1717 = vmatmul.mubr.msk.f32.vlgmr.msra.gmra.mrb[0].mxu1 %vm365_vm2, %v1333_v50 }
 0x118   : > { %v1688_v52 = vpop.f32.mrb[0].mxu0 }
 0x119   : > { %v901_v53 = vadd.f32 %v1688_v52, %v1594_v51  ;;  %v883_v54 = vpop.f32.mrb[1].mxu0 }
 0x11a   : > { %v900_v55 = vadd.f32 %v1594_v51, %v883_v54  ;;  %v1718_v56 = vpop.f32.mrb[0].mxu1 }
 0x11b   : > { %904 = vst.msk [vmem:[%s342_s25 + $0x8] sm:$0xff] %vm902_vm4, %v901_v53  ;;  %v1419_v57 = vadd.f32 %v1718_v56, %v1594_v51  ;;  %v1407_v58 = vpop.f32.mrb[1].mxu1 }
 0x11c   : > { %903 = vst.msk [vmem:[%s342_s25] sm:$0xff] %vm902_vm4, %v900_v55  ;;  %v1418_v59 = vadd.f32 %v1594_v51, %v1407_v58 }
 0x11d   : > { %1620 = vst.msk [vmem:[%s342_s25 + $0x18] sm:$0xff] %vm902_vm4, %v1419_v57 }
 0x11e   : > { %1619 = vst.msk [vmem:[%s342_s25 + $0x10] sm:$0xff] %vm902_vm4, %v1418_v59 }
 0x11f PF: > { %s15_s22 = sadd.s32 1, %s1821_s22   ;;  %s2036_s18 = smov %s1813_s20 }
 0x120   : > { %p12_p10 = scmp.ge.s32.totalorder %s15_s22, 34   ;;  %s2037_s19 = smov %s1817_s21 }
 0x121   : > { %s2038_s20 = smov %s2041_s23  ;;  %s2039_s21 = smov %s2045_s24 }
 0x122   :  { %14 = sbr.rel (!%p12_p10) target bundleno = 3 (0x3), region = 88 }

</bundles_post_ra>
